<compile_context>
chip_gen: v7x
topology: tpu7x:2x2x1
jax: 0.10.0
libtpu: 0.0.40
codegen_flags: <defaults>
</compile_context>

<pallas_src>
import numpy as np
import jax
import jax.numpy as jnp
from jax.experimental import pallas as pl
from jax.experimental.pallas import tpu as pltpu

_LANES = 128
_SUBLANES = 8
_TILE_ROWS = 512  # 512*128*4B = 256 KiB/stream/buffer -> ~2 MiB total with
                  # 4 streams x 2 pipeline buffers; fits every generation
                  # (incl. v7x's 32 MiB scoped / 64 MiB physical VMEM).


def _sampler_kernel(mu_ref, logvar_ref, eps_ref, out_ref):
    mu = mu_ref[...].astype(jnp.float32)
    lv = logvar_ref[...].astype(jnp.float32)
    eps = eps_ref[...].astype(jnp.float32)
    std = jnp.exp(0.5 * lv)
    out_ref[...] = (eps * std + mu).astype(out_ref.dtype)


def _cdiv(a, b):
    return -(-a // b)


def sampler(mu, log_var, *, key):
    """Pallas TPU implementation of VAE Sampler.forward(mu, log_var)."""
    assert mu.shape == log_var.shape
    assert mu.dtype == log_var.dtype
    orig_shape = mu.shape
    dtype = mu.dtype
    total = int(np.prod(orig_shape))

    # Choose a lane-aligned, sublane-aligned tiling of the flattened array.
    rows = _cdiv(total, _LANES)
    block_rows = min(_TILE_ROWS, _cdiv(rows, _SUBLANES) * _SUBLANES)
    padded_rows = _cdiv(rows, block_rows) * block_rows
    pad = padded_rows * _LANES - total

    mu_flat = mu.reshape(-1)
    lv_flat = log_var.reshape(-1)
    if pad:  # only materialize a padded copy when the shape is ragged
        mu_flat = jnp.pad(mu_flat, (0, pad))
        lv_flat = jnp.pad(lv_flat, (0, pad))
    mu2 = mu_flat.reshape(padded_rows, _LANES)
    lv2 = lv_flat.reshape(padded_rows, _LANES)

    # eps ~ N(0,1), generated directly at the padded/tiled shape (no pad op).
    eps2 = jax.random.normal(key, (padded_rows, _LANES), dtype=dtype)

    grid = (padded_rows // block_rows,)
    spec = pl.BlockSpec((block_rows, _LANES), lambda i: (i, 0))

    itemsize = np.dtype(dtype).itemsize
    cost = pl.CostEstimate(
        flops=2 * total,                      # mul + add per element
        transcendentals=total,                # exp per element
        bytes_accessed=4 * total * itemsize,  # mu, log_var, eps in; out
    )

    out = pl.pallas_call(
        _sampler_kernel,
        out_shape=jax.ShapeDtypeStruct((padded_rows, _LANES), dtype),
        grid=grid,
        in_specs=[spec, spec, spec],
        out_specs=spec,
        compiler_params=pltpu.CompilerParams(
            dimension_semantics=("parallel",)),
        cost_estimate=cost,
    )(mu2, lv2, eps2)

    out = out.reshape(-1)
    if pad:
        out = out[:total]
    return out.reshape(orig_shape)


if __name__ == "__main__":
    key = jax.random.PRNGKey(0)
    k_mu, k_lv, k_eps = jax.random.split(key, 3)

    # Small shapes consistent with a VAE latent map in NCHW convention.
    B, C, H, W = 2, 4, 16, 16
    mu = jax.random.normal(k_mu, (B, C, H, W), dtype=jnp.float32)
    log_var = 0.1 * jax.random.normal(k_lv, (B, C, H, W), dtype=jnp.float32)

    out = sampler(mu, log_var, key=k_eps)
    out = jax.block_until_ready(out)

    assert out.shape == mu.shape and out.dtype == mu.dtype
    assert bool(jnp.all(jnp.isfinite(out)))
    # Sanity: z = mu + std*eps, so (z - mu)/std should look ~N(0,1).
    eps_rec = (out - mu) / jnp.exp(0.5 * log_var)
    assert abs(float(jnp.mean(eps_rec))) < 0.2
    assert 0.7 < float(jnp.std(eps_rec)) < 1.3

    print("KERNEL_OK")
</pallas_src>

<mosaic_0001>
module attributes {stable_mosaic.version = 11 : i64} {
  func.func @_sampler_kernel(%arg0: i32, %arg1: memref<16x128xf32, #tpu.memory_space<vmem>>, %arg2: memref<16x128xf32, #tpu.memory_space<vmem>>, %arg3: memref<16x128xf32, #tpu.memory_space<vmem>>, %arg4: memref<16x128xf32, #tpu.memory_space<vmem>>) attributes {dimension_semantics = [#tpu.dimension_semantics<parallel>], iteration_bounds = array<i64: 1>, scalar_prefetch = 0 : i64, scratch_operands = 0 : i64, tpu.core_type = #tpu.core_type<tc>, window_params = [{transform_indices = @transform_0, window_bounds = array<i64: 16, 128>}, {transform_indices = @transform_1, window_bounds = array<i64: 16, 128>}, {transform_indices = @transform_2, window_bounds = array<i64: 16, 128>}, {transform_indices = @transform_3, window_bounds = array<i64: 16, 128>}]} {
    %c0 = arith.constant 0 : index
    %c0_0 = arith.constant 0 : index
    %0 = vector.load %arg1[%c0, %c0_0] : memref<16x128xf32, #tpu.memory_space<vmem>>, vector<16x128xf32>
    %c0_1 = arith.constant 0 : index
    %c0_2 = arith.constant 0 : index
    %1 = vector.load %arg2[%c0_1, %c0_2] : memref<16x128xf32, #tpu.memory_space<vmem>>, vector<16x128xf32>
    %c0_3 = arith.constant 0 : index
    %c0_4 = arith.constant 0 : index
    %2 = vector.load %arg3[%c0_3, %c0_4] : memref<16x128xf32, #tpu.memory_space<vmem>>, vector<16x128xf32>
    %cst = arith.constant 5.000000e-01 : f32
    %3 = vector.broadcast %cst : f32 to vector<16x128xf32>
    %4 = arith.mulf %3, %1 : vector<16x128xf32>
    %5 = math.exp %4 : vector<16x128xf32>
    %6 = arith.mulf %2, %5 : vector<16x128xf32>
    %7 = arith.addf %6, %0 : vector<16x128xf32>
    %c0_5 = arith.constant 0 : index
    %c0_6 = arith.constant 0 : index
    %8 = vector.load %arg4[%c0_5, %c0_6] : memref<16x128xf32, #tpu.memory_space<vmem>>, vector<16x128xf32>
    tpu.vector_store %arg4[%c0_5, %c0_6], %7 {strides = array<i32>} : memref<16x128xf32, #tpu.memory_space<vmem>>, vector<16x128xf32>,
    return
  }
  func.func @transform_0(%arg0: i32) -> (i32, i32) {
    %c0_i32 = arith.constant 0 : i32
    %c0_i32_0 = arith.constant 0 : i32
    return %arg0, %c0_i32 : i32, i32
  }
  func.func @transform_1(%arg0: i32) -> (i32, i32) {
    %c0_i32 = arith.constant 0 : i32
    %c0_i32_0 = arith.constant 0 : i32
    return %arg0, %c0_i32 : i32, i32
  }
  func.func @transform_2(%arg0: i32) -> (i32, i32) {
    %c0_i32 = arith.constant 0 : i32
    %c0_i32_0 = arith.constant 0 : i32
    return %arg0, %c0_i32 : i32, i32
  }
  func.func @transform_3(%arg0: i32) -> (i32, i32) {
    %c0_i32 = arith.constant 0 : i32
    %c0_i32_0 = arith.constant 0 : i32
    return %arg0, %c0_i32 : i32, i32
  }
}

</mosaic_0001>

<bundles_post_ra>
// kernel: tpu_custom_call.1
= control target key start
LH: loop header
LB: loop body
LE: loop exit
PB: predicated region body
PF: predicated region fallthrough
CT: control target
= control target key end

     0   :  { %8 = vsyncpa [#allocation3], 0  ;;  %s289_s0 = inlined_call_operand.hbm [shape: f32[16,128], index: 0, kind: input, shape index: {}]   ;;  %s290_s1 = inlined_call_operand.hbm [shape: f32[16,128], index: 1, kind: input, shape index: {}]   ;;  %s291_s2 = inlined_call_operand.hbm [shape: f32[16,128], index: 2, kind: input, shape index: {}]   ;;  %s292_s3 = inlined_call_operand.hbm [shape: f32[16,128], index: 3, kind: output, shape index: {}]  }
   0x1   :  { %9 = vsyncpa [#allocation6], 0 }
   0x2   :  { %10 = vsyncpa [#allocation4], 0  ;;  %s196_s12 = smov [#allocation5]   ;;  %s197_s14 = smov [#allocation2]  }
   0x3   :  { %s28_s13 = sshll.u32 %s196_s12, 4  ;;  %s16_s15 = sshll.u32 %s197_s14, 4  ;;  %s29_s13 = int_to_ptr.vmem [resolvable:$true] %s28_s13  ;;  %s222_s15 = int_to_ptr.vmem [resolvable:$true] %s16_s15 }
   0x4   :  { %s102_s18 = scalar_lea.hbm %s290_s1, 256 }
   0x5   :  { %p103_p0 = scmp.ne.s32.totalorder %s290_s1, %s102_s18  ;;  %p106_p1 = scmp.lt.u32.totalorder %s102_s18, %s290_s1 }
   0x7   :  { %p108_p2 = pnand %p106_p1, %p103_p0 }
   0x9   :  { %111 = shalt.err (!%p108_p2)
}
   0xa   :  { %s112_s23 = scalar_lea.vmem %s29_s13, 256  ;;  %p117_p4 = scmp.lt.s32.totalorder %s29_s13, %s29_s13 }
   0xb   :  { %p113_p3 = scmp.ne.s32.totalorder %s29_s13, %s112_s23  ;;  %p118_p5 = scmp.lt.s32.totalorder %s112_s23, %s112_s23 }
   0xd   :  { %p119_p6 = por %p118_p5, %p117_p4 }
   0xf   :  { %p120_p7 = pnand %p119_p6, %p113_p3 }
  0x11   :  { %123 = shalt.err (!%p120_p7)
}
  0x12   :  { %s198_s24 = smov 128   ;;  %s199_s25 = smov 8  }
  0x13   :  { %34 = dma.hbm_to_vmem [thread:$0]  %s290_s1, 256, %s29_s13, [#allocation6], %s198_s24, %s198_s24, %s199_s25  }
  0x14   :  { %s124_s30 = scalar_lea.hbm %s289_s0, 256 }
  0x15   :  { %p125_p8 = scmp.ne.s32.totalorder %s289_s0, %s124_s30  ;;  %p128_p9 = scmp.lt.u32.totalorder %s124_s30, %s289_s0 }
  0x17   :  { %p130_p10 = pnand %p128_p9, %p125_p8 }
  0x19   :  { %133 = shalt.err (!%p130_p10)
}
  0x1a   :  { %s134_s8 = scalar_lea.vmem %s222_s15, 256  ;;  %p139_p12 = scmp.lt.s32.totalorder %s222_s15, %s222_s15 }
  0x1b   :  { %p135_p11 = scmp.ne.s32.totalorder %s222_s15, %s134_s8  ;;  %p140_p13 = scmp.lt.s32.totalorder %s134_s8, %s134_s8 }
  0x1d   :  { %p141_p0 = por %p140_p13, %p139_p12 }
  0x1f   :  { %p142_p1 = pnand %p141_p0, %p135_p11 }
  0x21   :  { %145 = shalt.err (!%p142_p1)
}
  0x22   :  { %22 = dma.hbm_to_vmem [thread:$0]  %s289_s0, 256, %s222_s15, [#allocation3], %s198_s24, %s198_s24, %s199_s25  }
  0x23   :  { %s200_s10 = smov [#allocation7]   ;;  %s146_s14 = scalar_lea.hbm %s291_s2, 256 }
  0x24   :  { %s40_s11 = sshll.u32 %s200_s10, 4  ;;  %p147_p2 = scmp.ne.s32.totalorder %s291_s2, %s146_s14  ;;  %s41_s11 = int_to_ptr.vmem [resolvable:$true] %s40_s11 }
  0x25   :  { %p150_p3 = scmp.lt.u32.totalorder %s146_s14, %s291_s2 }
  0x27   :  { %p152_p4 = pnand %p150_p3, %p147_p2 }
  0x29   :  { %155 = shalt.err (!%p152_p4)
}
  0x2a   :  { %s156_s20 = scalar_lea.vmem %s41_s11, 256  ;;  %p161_p6 = scmp.lt.s32.totalorder %s41_s11, %s41_s11 }
  0x2b   :  { %p157_p5 = scmp.ne.s32.totalorder %s41_s11, %s156_s20  ;;  %p162_p7 = scmp.lt.s32.totalorder %s156_s20, %s156_s20 }
  0x2d   :  { %p163_p8 = por %p162_p7, %p161_p6 }
  0x2f   :  { %p164_p9 = pnand %p163_p8, %p157_p5 }
  0x31   :  { %167 = shalt.err (!%p164_p9)
}
  0x32   :  { %46 = dma.hbm_to_vmem [thread:$0]  %s291_s2, 256, %s41_s11, [#allocation6], %s198_s24, %s198_s24, %s199_s25  }
  0x33   :  { %190 = dma.done.wait [#allocation3], 256  }
  0x34   :  { %191 = vsyncadd [#allocation3], 4294967040 }
  0x35   :  { %192 = dma.done.wait [#allocation6], 512  }
  0x36   :  { %193 = vsyncadd [#allocation6], 4294966784  ;;  %v58_v0 = vld [vmem:[#allocation5] sm:$0xff]  ;;  %v59_v2 = vld [vmem:[#allocation5 + $0x8] sm:$0xff]  ;;  %s201_s2 = smov [#allocation8]  }
  0x37   :  { %v62_v1 = vmul.f32 0.5, %v58_v0  ;;  %v63_v3 = vmul.f32 0.5, %v59_v2  ;;  %v60_v6 = vld [vmem:[#allocation7] sm:$0xff]  ;;  %v61_v7 = vld [vmem:[#allocation7 + $0x8] sm:$0xff]  ;;  %s79_s21 = sshll.u32 %s201_s2, 4  ;;  %s80_s21 = int_to_ptr.vmem [resolvable:$true] %s79_s21 }
  0x38   :  { %v56_v9 = vld [vmem:[#allocation2] sm:$0xff]  ;;  %v57_v12 = vld [vmem:[#allocation2 + $0x8] sm:$0xff]  ;;  %s168_s22 = scalar_lea.vmem %s80_s21, 256  ;;  %p173_p11 = scmp.lt.s32.totalorder %s80_s21, %s80_s21 }
  0x39   :  { %v64_v4 = vmul.f32 1.442695, %v62_v1  ;;  %v66_v5 = vmul.f32 1.442695, %v63_v3  ;;  %p169_p10 = scmp.ne.s32.totalorder %s80_s21, %s168_s22  ;;  %p174_p12 = scmp.lt.s32.totalorder %s168_s22, %s168_s22 }
  0x3b   :  { %98 = vpow2.f32 %v64_v4  ;;  %p175_p13 = por %p174_p12, %p173_p11 }
  0x3c   :  { %100 = vpow2.f32 %v66_v5 }
  0x3d   :  { %p176_p0 = pnand %p175_p13, %p169_p10 }
  0x45   :  { %v99_v8 = vpop.eup %98 }
  0x46   :  { %v101_v10 = vpop.eup %100  ;;  %v68_v11 = vmul.f32 %v99_v8, %v60_v6 }
  0x47   :  { %v69_v13 = vmul.f32 %v101_v10, %v61_v7 }
  0x48   :  { %v70_v14 = vadd.f32 %v68_v11, %v56_v9 }
  0x49   :  { %v71_v15 = vadd.f32 %v69_v13, %v57_v12 }
  0x4a   :  { %72 = vst [vmem:[#allocation8] sm:$0xff] %v70_v14 }
  0x4b   :  { %73 = vst [vmem:[#allocation8 + $0x8] sm:$0xff] %v71_v15 }
  0x4c   :  { %179 = shalt.err (!%p176_p0)
}
  0x4d   :  { %s180_s27 = scalar_lea.hbm %s292_s3, 256 }
  0x4e   :  { %p181_p1 = scmp.ne.s32.totalorder %s292_s3, %s180_s27  ;;  %p184_p2 = scmp.lt.u32.totalorder %s180_s27, %s292_s3 }
  0x50   :  { %p186_p3 = pnand %p184_p2, %p181_p1 }
  0x52   :  { %189 = shalt.err (!%p186_p3)
}
  0x53   :  { %85 = dma.vmem_to_hbm [thread:$0]  %s80_s21, 256, %s292_s3, [#allocation4], %s198_s24, %s198_s24, %s199_s25  }
  0x54   :  { %194 = dma.done.wait [#allocation4], 256  }
  0x55   :  { %195 = vsyncadd [#allocation4], 4294967040 }
  0x56   :  { %89 = vsyncpa [#allocation3], 1 }
  0x57   :  { %90 = vsyncpa [#allocation6], 1 }
  0x58   :  { %91 = vsyncpa [#allocation4], 1 }

</bundles_post_ra>
